<compile_context>
chip_gen: v7x
topology: tpu7x:2x2x1
jax: 0.10.0
libtpu: 0.0.40
codegen_flags: <defaults>
</compile_context>

<pallas_src>
import functools

import jax
import jax.numpy as jnp
from jax.experimental import pallas as pl
from jax.experimental.pallas import tpu as pltpu

_LANE = 128      # lane width (last dim of a vreg)
_SUBLANE = 8     # sublane width (second-to-last dim)

_VMEM_LIMIT_BYTES = 32 * 1024 * 1024   # explicit: v5e scoped default is only 16 MiB
_TILE_VMEM_BUDGET = 12 * 1024 * 1024   # target working-set for the batch tile (temps headroom)
_MAX_BATCH_TILE = 8192
_RESIDENT_WEIGHT_BF16_THRESHOLD = 16 * 1024 * 1024   # guard for v7x's 64 MiB physical VMEM


def _round_up(x, m):
    return ((x + m - 1) // m) * m


def _cdiv(a, b):
    return (a + b - 1) // b


def _mlp_kernel(num_layers, *refs):
    """refs = (x_ref, w1, b1, ..., wL, bL, o_ref); weights/biases are VMEM-resident."""
    x_ref = refs[0]
    o_ref = refs[-1]
    param_refs = refs[1:-1]

    h = x_ref[...]
    if h.dtype != jnp.float32:          # no-op for f32 inputs
        h = h.astype(jnp.float32)

    for i in range(num_layers):
        w = param_refs[2 * i][...]       # [fan_in, fan_out], true (unpadded) sizes, f32 or bf16
        b = param_refs[2 * i + 1][...]   # [1, fan_out], f32
        lhs = h if h.dtype == w.dtype else h.astype(w.dtype)   # bf16 cast only at the MXU input
        h = jnp.dot(lhs, w, preferred_element_type=jnp.float32) + b
        if i < num_layers - 1:           # hidden layers get ReLU; final Linear does not
            h = jnp.maximum(h, 0.0)

    o_ref[...] = h.astype(o_ref.dtype)   # narrow (out_size-wide) store: bytes are what matter


def _vmem_row_bytes(feature_sizes):
    """Approx VMEM bytes one batch row costs in-kernel (lane dim pads to 128 in VMEM layout)."""
    w = [4 * _round_up(max(f, 1), _LANE) for f in feature_sizes]
    # x tile (double-buffered) + out tile (double-buffered) + one live f32 intermediate per
    # hidden layer + headroom for compiler temporaries.
    return 2 * w[0] + 2 * w[-1] + sum(w[1:-1]) + max(w)


def _choose_batch_tile(batch, feature_sizes, batch_block):
    if batch_block is not None:
        tb = int(batch_block)
        assert tb == batch or tb % _SUBLANE == 0, (
            "batch_block must be a multiple of 8 or equal to the batch size")
        return tb
    tb_max = _TILE_VMEM_BUDGET // _vmem_row_bytes(feature_sizes)
    tb_max = max(_SUBLANE, min(_MAX_BATCH_TILE, (tb_max // _SUBLANE) * _SUBLANE))
    if batch <= tb_max:
        return batch     # single grid step; block dim == full array dim is always legal
    # Large batch: even number of steps (>=2) so both v7x TensorCores get work on the
    # "parallel" axis; on single-TC v5e/v6e the possible extra step costs ~0.35us (noise).
    steps = _cdiv(batch, tb_max)
    if steps % 2 == 1:
        steps += 1
    return _round_up(_cdiv(batch, steps), _SUBLANE)


def fnn_forward(x, params, *, batch_block=None, matmul_dtype=None):
    """Fused FNN forward pass.

    x            : [B, input_size]
    params       : list of (W, b); W: [fan_in, fan_out], b: [1, fan_out], f32
                   (== PyTorch y = x @ W_pt.T + b with W = W_pt.T)
    batch_block  : optional batch tile override (multiple of 8, or == B)
    matmul_dtype : e.g. jnp.bfloat16 -> bf16 weights / MXU inputs, f32 accumulation
    """
    batch, in_size = x.shape
    out_size = params[-1][0].shape[1]
    num_layers = len(params)
    feature_sizes = [in_size] + [w.shape[1] for w, _ in params]

    # ---- resident-weight VMEM guard (matters on v7x: 64 MiB physical / 32 MiB scoped) ----
    w_bytes_f32 = sum(
        _round_up(w.shape[0], _SUBLANE) * _round_up(w.shape[1], _LANE) * 4 for w, _ in params)
    weight_dtype = matmul_dtype
    if weight_dtype is None and w_bytes_f32 > _RESIDENT_WEIGHT_BF16_THRESHOLD:
        weight_dtype = jnp.bfloat16   # halve the resident footprint; f32 accumulation kept
    # TODO(synk): for layer widths whose weights do not fit in VMEM even as bf16, switch the
    # large layers to a K/N-tiled BlockSpec pipeline instead of whole-array VMEM residency.

    flat_params = []
    for w, b in params:
        if weight_dtype is not None and jnp.dtype(weight_dtype) != jnp.dtype(jnp.float32):
            w = w.astype(weight_dtype)   # bias stays f32
        flat_params.extend([w, b])

    # ---- batch tiling: no wrapper-side padding; a cdiv edge block handles the remainder ----
    tb = _choose_batch_tile(batch, feature_sizes, batch_block)
    grid = (_cdiv(batch, tb),)

    in_specs = [pl.BlockSpec((tb, in_size), lambda i: (i, 0))]
    in_specs += [pl.BlockSpec(memory_space=pltpu.MemorySpace.VMEM)] * (2 * num_layers)
    out_spec = pl.BlockSpec((tb, out_size), lambda i: (i, 0))

    return pl.pallas_call(
        functools.partial(_mlp_kernel, num_layers),
        out_shape=jax.ShapeDtypeStruct((batch, out_size), x.dtype),
        grid=grid,
        in_specs=in_specs,
        out_specs=out_spec,
        compiler_params=pltpu.CompilerParams(
            dimension_semantics=("parallel",),
            vmem_limit_bytes=_VMEM_LIMIT_BYTES,
        ),
    )(x, *flat_params)


def init_fnn_params(key, input_size, output_size, hidden_layer_sizes):
    """Deterministic init mimicking nn.Linear default (U(-1/sqrt(fan_in), 1/sqrt(fan_in)))."""
    sizes = [input_size] + list(hidden_layer_sizes) + [output_size]
    params = []
    for i in range(len(sizes) - 1):
        fan_in, fan_out = sizes[i], sizes[i + 1]
        key, kw, kb = jax.random.split(key, 3)
        bound = 1.0 / jnp.sqrt(jnp.float32(fan_in))
        w = jax.random.uniform(kw, (fan_in, fan_out), jnp.float32, -bound, bound)
        b = jax.random.uniform(kb, (1, fan_out), jnp.float32, -bound, bound)
        params.append((w, b))
    return params


def fnn_reference(x, params):
    """Pure-JAX reference for correctness checking."""
    h = x
    for w, b in params[:-1]:
        h = jnp.maximum(h @ w + b, 0.0)
    w, b = params[-1]
    return h @ w + b


if __name__ == "__main__":
    # FNNModel(input_size=16, output_size=1, hidden_layer_sizes=[32, 32], dropout_prob=0.0)
    key = jax.random.PRNGKey(0)
    key, kx = jax.random.split(key)

    batch = 256
    input_size = 16
    output_size = 1
    hidden_layer_sizes = [32, 32]

    x = jax.random.normal(kx, (batch, input_size), jnp.float32)
    params = init_fnn_params(key, input_size, output_size, hidden_layer_sizes)
    ref = fnn_reference(x, params)

    # Default path: single grid step (batch fits one tile), f32 MXU -> tight tolerance.
    out = jax.block_until_ready(fnn_forward(x, params))
    assert out.shape == (batch, output_size)
    assert jnp.allclose(out, ref, atol=1e-5, rtol=1e-5), "f32 path mismatch vs reference"

    # Multi-step grid with a ragged edge block (300 rows @ 128-row tiles -> 3 steps, last=44).
    x2 = jax.random.normal(kx, (300, input_size), jnp.float32)
    ref2 = fnn_reference(x2, params)
    out2 = jax.block_until_ready(fnn_forward(x2, params, batch_block=128))
    assert out2.shape == (300, output_size)
    assert jnp.allclose(out2, ref2, atol=1e-5, rtol=1e-5), "edge-block path mismatch"

    # bf16-at-the-MXU fast path (f32 accumulation / bias / ReLU) -> looser tolerance.
    out_bf16 = jax.block_until_ready(fnn_forward(x, params, matmul_dtype=jnp.bfloat16))
    assert out_bf16.shape == (batch, output_size)
    assert jnp.allclose(out_bf16, ref, atol=5e-2, rtol=5e-2), "bf16 path mismatch vs reference"

    # TODO(synk): training-mode nn.Dropout (dropout_prob > 0) is not implemented; the module's
    # default dropout_prob=0.0 makes it an identity, so it is omitted here.
    print("KERNEL_OK")
</pallas_src>

<mosaic_0001>
module attributes {stable_mosaic.version = 11 : i64} {
  func.func @_mlp_kernel(%arg0: i32, %arg1: memref<256x16xf32, #tpu.memory_space<vmem>>, %arg2: memref<16x32xf32, #tpu.memory_space<vmem>>, %arg3: memref<1x32xf32, #tpu.memory_space<vmem>>, %arg4: memref<32x32xf32, #tpu.memory_space<vmem>>, %arg5: memref<1x32xf32, #tpu.memory_space<vmem>>, %arg6: memref<32x1xf32, #tpu.memory_space<vmem>>, %arg7: memref<1x1xf32, #tpu.memory_space<vmem>>, %arg8: memref<256x1xf32, #tpu.memory_space<vmem>>) attributes {dimension_semantics = [#tpu.dimension_semantics<parallel>], iteration_bounds = array<i64: 1>, scalar_prefetch = 0 : i64, scratch_operands = 0 : i64, tpu.core_type = #tpu.core_type<tc>, window_params = [{transform_indices = @transform_0, window_bounds = array<i64: 256, 16>}, {pipeline_mode = #tpu.pipeline_mode<synchronous>, transform_indices = @transform_1, window_bounds = array<i64: 16, 32>}, {pipeline_mode = #tpu.pipeline_mode<synchronous>, transform_indices = @transform_2, window_bounds = array<i64: 1, 32>}, {pipeline_mode = #tpu.pipeline_mode<synchronous>, transform_indices = @transform_3, window_bounds = array<i64: 32, 32>}, {pipeline_mode = #tpu.pipeline_mode<synchronous>, transform_indices = @transform_4, window_bounds = array<i64: 1, 32>}, {pipeline_mode = #tpu.pipeline_mode<synchronous>, transform_indices = @transform_5, window_bounds = array<i64: 32, 1>}, {pipeline_mode = #tpu.pipeline_mode<synchronous>, transform_indices = @transform_6, window_bounds = array<i64: 1, 1>}, {transform_indices = @transform_7, window_bounds = array<i64: 256, 1>}]} {
    %c0 = arith.constant 0 : index
    %c0_0 = arith.constant 0 : index
    %0 = vector.load %arg1[%c0, %c0_0] : memref<256x16xf32, #tpu.memory_space<vmem>>, vector<256x16xf32>
    %c0_1 = arith.constant 0 : index
    %c0_2 = arith.constant 0 : index
    %1 = vector.load %arg2[%c0_1, %c0_2] : memref<16x32xf32, #tpu.memory_space<vmem>>, vector<16x32xf32>
    %c0_3 = arith.constant 0 : index
    %c0_4 = arith.constant 0 : index
    %2 = vector.load %arg3[%c0_3, %c0_4] : memref<1x32xf32, #tpu.memory_space<vmem>>, vector<1x32xf32>
    %cst = arith.constant dense<0.000000e+00> : vector<256x32xf32>
    %3 = tpu.matmul %0, %1, %cst {dimension_numbers = #tpu.dot_dimension_numbers<[1], [0], [0], [1], [0, 0, 1, 1], [], []>} : vector<256x16xf32>, vector<16x32xf32>, vector<256x32xf32> -> vector<256x32xf32>
    %4 = vector.broadcast %2 : vector<1x32xf32> to vector<256x32xf32>
    %5 = arith.addf %3, %4 : vector<256x32xf32>
    %cst_5 = arith.constant 0.000000e+00 : f32
    %6 = vector.broadcast %cst_5 : f32 to vector<256x32xf32>
    %7 = arith.maximumf %5, %6 : vector<256x32xf32>
    %c0_6 = arith.constant 0 : index
    %c0_7 = arith.constant 0 : index
    %8 = vector.load %arg4[%c0_6, %c0_7] : memref<32x32xf32, #tpu.memory_space<vmem>>, vector<32x32xf32>
    %c0_8 = arith.constant 0 : index
    %c0_9 = arith.constant 0 : index
    %9 = vector.load %arg5[%c0_8, %c0_9] : memref<1x32xf32, #tpu.memory_space<vmem>>, vector<1x32xf32>
    %cst_10 = arith.constant dense<0.000000e+00> : vector<256x32xf32>
    %10 = tpu.matmul %7, %8, %cst_10 {dimension_numbers = #tpu.dot_dimension_numbers<[1], [0], [0], [1], [0, 0, 1, 1], [], []>} : vector<256x32xf32>, vector<32x32xf32>, vector<256x32xf32> -> vector<256x32xf32>
    %11 = vector.broadcast %9 : vector<1x32xf32> to vector<256x32xf32>
    %12 = arith.addf %10, %11 : vector<256x32xf32>
    %cst_11 = arith.constant 0.000000e+00 : f32
    %13 = vector.broadcast %cst_11 : f32 to vector<256x32xf32>
    %14 = arith.maximumf %12, %13 : vector<256x32xf32>
    %c0_12 = arith.constant 0 : index
    %c0_13 = arith.constant 0 : index
    %15 = vector.load %arg6[%c0_12, %c0_13] : memref<32x1xf32, #tpu.memory_space<vmem>>, vector<32x1xf32>
    %c0_14 = arith.constant 0 : index
    %c0_15 = arith.constant 0 : index
    %16 = vector.load %arg7[%c0_14, %c0_15] : memref<1x1xf32, #tpu.memory_space<vmem>>, vector<1x1xf32>
    %cst_16 = arith.constant dense<0.000000e+00> : vector<256x1xf32>
    %17 = tpu.matmul %14, %15, %cst_16 {dimension_numbers = #tpu.dot_dimension_numbers<[1], [0], [0], [1], [0, 0, 1, 1], [], []>} : vector<256x32xf32>, vector<32x1xf32>, vector<256x1xf32> -> vector<256x1xf32>
    %18 = vector.broadcast %16 : vector<1x1xf32> to vector<256x1xf32>
    %19 = arith.addf %17, %18 : vector<256x1xf32>
    %c0_17 = arith.constant 0 : index
    %c0_18 = arith.constant 0 : index
    %20 = vector.load %arg8[%c0_17, %c0_18] : memref<256x1xf32, #tpu.memory_space<vmem>>, vector<256x1xf32>
    tpu.vector_store %arg8[%c0_17, %c0_18], %19 {strides = array<i32>} : memref<256x1xf32, #tpu.memory_space<vmem>>, vector<256x1xf32>,
    return
  }
  func.func @transform_0(%arg0: i32) -> (i32, i32) {
    %c0_i32 = arith.constant 0 : i32
    %c0_i32_0 = arith.constant 0 : i32
    return %arg0, %c0_i32 : i32, i32
  }
  func.func @transform_1(%arg0: i32) -> (i32, i32) {
    %c0_i32 = arith.constant 0 : i32
    %c0_i32_0 = arith.constant 0 : i32
    %c0_i32_1 = arith.constant 0 : i32
    return %c0_i32, %c0_i32_0 : i32, i32
  }
  func.func @transform_2(%arg0: i32) -> (i32, i32) {
    %c0_i32 = arith.constant 0 : i32
    %c0_i32_0 = arith.constant 0 : i32
    %c0_i32_1 = arith.constant 0 : i32
    return %c0_i32, %c0_i32_0 : i32, i32
  }
  func.func @transform_3(%arg0: i32) -> (i32, i32) {
    %c0_i32 = arith.constant 0 : i32
    %c0_i32_0 = arith.constant 0 : i32
    %c0_i32_1 = arith.constant 0 : i32
    return %c0_i32, %c0_i32_0 : i32, i32
  }
  func.func @transform_4(%arg0: i32) -> (i32, i32) {
    %c0_i32 = arith.constant 0 : i32
    %c0_i32_0 = arith.constant 0 : i32
    %c0_i32_1 = arith.constant 0 : i32
    return %c0_i32, %c0_i32_0 : i32, i32
  }
  func.func @transform_5(%arg0: i32) -> (i32, i32) {
    %c0_i32 = arith.constant 0 : i32
    %c0_i32_0 = arith.constant 0 : i32
    %c0_i32_1 = arith.constant 0 : i32
    return %c0_i32, %c0_i32_0 : i32, i32
  }
  func.func @transform_6(%arg0: i32) -> (i32, i32) {
    %c0_i32 = arith.constant 0 : i32
    %c0_i32_0 = arith.constant 0 : i32
    %c0_i32_1 = arith.constant 0 : i32
    return %c0_i32, %c0_i32_0 : i32, i32
  }
  func.func @transform_7(%arg0: i32) -> (i32, i32) {
    %c0_i32 = arith.constant 0 : i32
    %c0_i32_0 = arith.constant 0 : i32
    return %arg0, %c0_i32 : i32, i32
  }
}

</mosaic_0001>

<bundles_post_ra>
// kernel: tpu_custom_call.1
= control target key start
LH: loop header
LB: loop body
LE: loop exit
PB: predicated region body
PF: predicated region fallthrough
CT: control target
= control target key end

     0   :  { %vm69_vm0 = vcmask 130048   ;;  %vm434_vm1 = vcmask 261120   ;;  %vm1120_vm2 = vcmask 7168   ;;  %s2070_s1 = inlined_call_operand.vmem [shape: f32[16,32], index: 1, kind: input, shape index: {}]   ;;  %s2071_s0 = inlined_call_operand.vmem [shape: f32[256,16], index: 0, kind: input, shape index: {}]   ;;  %s2072_s3 = inlined_call_operand.vmem [shape: f32[32,32], index: 3, kind: input, shape index: {}]   ;;  %s2073_s5 = inlined_call_operand.vmem [shape: f32[32,1], index: 5, kind: input, shape index: {}]   ;;  %s2074_s2 = inlined_call_operand.vmem [shape: f32[1,32], index: 2, kind: input, shape index: {}]   ;;  %s2075_s6 = inlined_call_operand.<no memory space> [shape: f32[1,1], index: 6, kind: input, shape index: {}]   ;;  %s2076_s4 = inlined_call_operand.vmem [shape: f32[1,32], index: 4, kind: input, shape index: {}]   ;;  %s2077_s7 = inlined_call_operand.vmem [shape: f32[256,1], index: 7, kind: output, shape index: {}]  }
   0x1   :  { %v60_v0 = vld [vmem:[%s2070_s1] sm:$0xff]  ;;  %v61_v1 = vld [vmem:[%s2070_s1 + $0x8] sm:$0xff]  ;;  %v30_v5 = vld [vmem:[%s2071_s0 + $0x10] sm:$0xff] }
   0x2   :  { %v28_v2 = vld [vmem:[%s2071_s0] sm:$0xff]  ;;  %v1526_v3 = vpack.c.bf16 %v61_v1, %v60_v0  ;;  %v29_v4 = vld [vmem:[%s2071_s0 + $0x8] sm:$0xff]  ;;  %v46_v8 = vld [vmem:[%s2071_s0 + $0x90] sm:$0xff] }
   0x3   :  { %1366 = vmatprep.mubr.msk.f32.mxu0 %vm69_vm0, %v28_v2  ;;  %v44_v6 = vld [vmem:[%s2071_s0 + $0x80] sm:$0xff]  ;;  %v45_v7 = vld [vmem:[%s2071_s0 + $0x88] sm:$0xff]  ;;  %v31_v9 = vld [vmem:[%s2071_s0 + $0x18] sm:$0xff] }
   0x4   :  { %1527 = vmatprep.subr.bf16.mxu0 %v1526_v3  ;;  %1546 = vmatprep.subr.bf16.mxu1 %v1526_v3  ;;  %v32_v10 = vld [vmem:[%s2071_s0 + $0x20] sm:$0xff]  ;;  %v47_v11 = vld [vmem:[%s2071_s0 + $0x98] sm:$0xff]  ;;  %v424_v14 = vld [vmem:[%s2072_s3 + $0x8] sm:$0xff] }
   0x5   :  { %1529 = vmatpush3.bf16.msra.mxu0 %v1526_v3  ;;  %1547 = vmatpush3.bf16.msra.mxu1 %v1526_v3  ;;  %v48_v12 = vld [vmem:[%s2071_s0 + $0xa0] sm:$0xff]  ;;  %v33_v15 = vld [vmem:[%s2071_s0 + $0x28] sm:$0xff]  ;;  %v425_v17 = vld [vmem:[%s2072_s3 + $0x10] sm:$0xff] }
   0x6   :  { %1390 = vmatprep.mubr.msk.f32.mxu1 %vm69_vm0, %v44_v6  ;;  %v423_v13 = vld [vmem:[%s2072_s3] sm:$0xff]  ;;  %v426_v18 = vld [vmem:[%s2072_s3 + $0x18] sm:$0xff]  ;;  %v34_v19 = vld [vmem:[%s2071_s0 + $0x30] sm:$0xff] }
   0x7   :  { %v1530_v16 = vpack.c.bf16 %v424_v14, %v423_v13  ;;  %v49_v20 = vld [vmem:[%s2071_s0 + $0xa8] sm:$0xff]  ;;  %v1534_v21 = vpack.c.bf16 %v426_v18, %v425_v17  ;;  %v50_v22 = vld [vmem:[%s2071_s0 + $0xb0] sm:$0xff]  ;;  %v35_v23 = vld [vmem:[%s2071_s0 + $0x38] sm:$0xff] }
   0x8   :  { %1367 = vmatmul.mubr.msk.f32.vlgmr.msra.gmra.mrb[0].mxu0 %vm69_vm0, %v29_v4  ;;  %1391 = vmatmul.mubr.msk.f32.vlgmr.msra.gmra.mrb[0].mxu1 %vm69_vm0, %v45_v7  ;;  %v36_v24 = vld [vmem:[%s2071_s0 + $0x40] sm:$0xff]  ;;  %v51_v25 = vld [vmem:[%s2071_s0 + $0xb8] sm:$0xff]  ;;  %v37_v27 = vld [vmem:[%s2071_s0 + $0x48] sm:$0xff] }
   0x9   :  { %1369 = vmatprep.mubr.msk.f32.mxu0 %vm69_vm0, %v30_v5  ;;  %1393 = vmatprep.mubr.msk.f32.mxu1 %vm69_vm0, %v46_v8  ;;  %v52_v26 = vld [vmem:[%s2071_s0 + $0xc0] sm:$0xff]  ;;  %v38_v28 = vld [vmem:[%s2071_s0 + $0x50] sm:$0xff]  ;;  %v53_v29 = vld [vmem:[%s2071_s0 + $0xc8] sm:$0xff] }
   0xa   :  { %1531 = vmatprep.subr.bf16.mxu1 %v1530_v16  ;;  %v54_v30 = vld [vmem:[%s2071_s0 + $0xd0] sm:$0xff]  ;;  %v39_v31 = vld [vmem:[%s2071_s0 + $0x58] sm:$0xff]  ;;  %v40_v32 = vld [vmem:[%s2071_s0 + $0x60] sm:$0xff] }
   0xb   :  { %1533 = vmatpush3.bf16.msra.mxu1 %v1530_v16  ;;  %v55_v33 = vld [vmem:[%s2071_s0 + $0xd8] sm:$0xff]  ;;  %v56_v34 = vld [vmem:[%s2071_s0 + $0xe0] sm:$0xff]  ;;  %v41_v35 = vld [vmem:[%s2071_s0 + $0x68] sm:$0xff] }
   0xc   :  { %1370 = vmatmul.mubr.msk.f32.gmra.mrb[2].mxu0 %vm69_vm0, %v31_v9  ;;  %1394 = vmatmul.mubr.msk.f32.gmra.mrb[2].mxu1 %vm69_vm0, %v47_v11  ;;  %v42_v36 = vld [vmem:[%s2071_s0 + $0x70] sm:$0xff]  ;;  %v57_v37 = vld [vmem:[%s2071_s0 + $0xe8] sm:$0xff]  ;;  %v43_v39 = vld [vmem:[%s2071_s0 + $0x78] sm:$0xff] }
   0xd   :  { %1372 = vmatprep.mubr.msk.f32.mxu0 %vm69_vm0, %v32_v10  ;;  %1396 = vmatprep.mubr.msk.f32.mxu1 %vm69_vm0, %v48_v12  ;;  %v58_v38 = vld [vmem:[%s2071_s0 + $0xf0] sm:$0xff]  ;;  %v59_v40 = vld [vmem:[%s2071_s0 + $0xf8] sm:$0xff]  ;;  %v788_v41 = vld [vmem:[%s2073_s5] sm:$0xff] }
   0xe   :  { %1535 = vmatprep.subr.bf16.mxu1 %v1534_v21  ;;  %v789_v42 = vld [vmem:[%s2073_s5 + $0x8] sm:$0xff]  ;;  %v790_v43 = vld [vmem:[%s2073_s5 + $0x10] sm:$0xff]  ;;  %v791_v45 = vld [vmem:[%s2073_s5 + $0x18] sm:$0xff] }
   0xf   :  { %1537 = vmatpush3.bf16.msra.mxu1 %v1534_v21  ;;  %v1538_v44 = vpack.c.bf16 %v789_v42, %v788_v41  ;;  %v1542_v46 = vpack.c.bf16 %v791_v45, %v790_v43  ;;  %v1749_v47 = vld [vmem:[%s2074_s2] ss:$0 sm:$0xff] }
  0x10   :  { %1373 = vmatmul.mubr.msk.f32.gmra.mrb[4].mxu0 %vm69_vm0, %v33_v15  ;;  %1397 = vmatmul.mubr.msk.f32.gmra.mrb[4].mxu1 %vm69_vm0, %v49_v20 }
  0x11   :  { %1375 = vmatprep.mubr.msk.f32.mxu0 %vm69_vm0, %v34_v19  ;;  %1399 = vmatprep.mubr.msk.f32.mxu1 %vm69_vm0, %v50_v22 }
  0x12   :  { %1539 = vmatprep.subr.bf16.mxu0 %v1538_v44 }
  0x13   :  { %1541 = vmatpush3.bf16.msra.mxu0 %v1538_v44 }
  0x14   :  { %1376 = vmatmul.mubr.msk.f32.gmra.mrb[6].mxu0 %vm69_vm0, %v35_v23  ;;  %1400 = vmatmul.mubr.msk.f32.gmra.mrb[6].mxu1 %vm69_vm0, %v51_v25 }
  0x15   :  { %1378 = vmatprep.mubr.msk.f32.mxu0 %vm69_vm0, %v36_v24  ;;  %1402 = vmatprep.mubr.msk.f32.mxu1 %vm69_vm0, %v52_v26 }
  0x16   :  { %1543 = vmatprep.subr.bf16.mxu0 %v1542_v46 }
  0x17   :  { %1545 = vmatpush3.bf16.msra.mxu0 %v1542_v46 }
  0x18   :  { %1379 = vmatmul.mubr.msk.f32.gmra.mrb[8].mxu0 %vm69_vm0, %v37_v27  ;;  %1403 = vmatmul.mubr.msk.f32.gmra.mrb[8].mxu1 %vm69_vm0, %v53_v29 }
  0x19   :  { %1381 = vmatprep.mubr.msk.f32.mxu0 %vm69_vm0, %v38_v28  ;;  %1405 = vmatprep.mubr.msk.f32.mxu1 %vm69_vm0, %v54_v30 }
  0x1c   :  { %1382 = vmatmul.mubr.msk.f32.gmra.mrb[10].mxu0 %vm69_vm0, %v39_v31  ;;  %1406 = vmatmul.mubr.msk.f32.gmra.mrb[10].mxu1 %vm69_vm0, %v55_v33 }
  0x1d   :  { %1384 = vmatprep.mubr.msk.f32.mxu0 %vm69_vm0, %v40_v32  ;;  %1408 = vmatprep.mubr.msk.f32.mxu1 %vm69_vm0, %v56_v34 }
  0x20   :  { %1385 = vmatmul.mubr.msk.f32.gmra.mrb[12].mxu0 %vm69_vm0, %v41_v35  ;;  %1409 = vmatmul.mubr.msk.f32.gmra.mrb[12].mxu1 %vm69_vm0, %v57_v37 }
  0x21   :  { %1387 = vmatprep.mubr.msk.f32.mxu0 %vm69_vm0, %v42_v36  ;;  %1411 = vmatprep.mubr.msk.f32.mxu1 %vm69_vm0, %v58_v38 }
  0x24   :  { %1388 = vmatmul.mubr.msk.f32.gmra.mrb[14].mxu0 %vm69_vm0, %v43_v39  ;;  %1412 = vmatmul.mubr.msk.f32.gmra.mrb[14].mxu1 %vm69_vm0, %v59_v40 }
  0xdb   :  { %v1368_v48 = vpop.f32.mrb[0].mxu0  ;;  %v1752_v51 = vpop.f32.mrb[0].mxu1 }
  0xdc   :  { %v238_v49 = vadd.f32 %v1368_v48, %v1749_v47  ;;  %v232_v50 = vpop.f32.mrb[1].mxu0  ;;  %v1755_v53 = vpop.f32.mrb[1].mxu1 }
  0xdd   :  { %v233_v52 = vadd.f32 %v1749_v47, %v232_v50  ;;  %v313_v40 = vadd.f32 %v1749_v47, %v1755_v53  ;;  %v318_v53 = vadd.f32 %v1752_v51, %v1749_v47 }
  0xde   :  { %v392_v56 = vmax.f32 %v238_v49, 0.0 }
  0xdf   :  { %v391_v54 = vmax.f32 %v233_v52, 0.0  ;;  %v1371_v55 = vpop.f32.mrb[2].mxu0  ;;  %v1758_v59 = vpop.f32.mrb[2].mxu1  ;;  %v407_v49 = vmax.f32 %v313_v40, 0.0 }
  0xe0   :  { %v248_v57 = vadd.f32 %v1371_v55, %v1749_v47  ;;  %v242_v58 = vpop.f32.mrb[3].mxu0  ;;  %v1762_v61 = vpop.f32.mrb[3].mxu1 }
  0xe1   :  { %v243_v60 = vadd.f32 %v1749_v47, %v242_v58  ;;  %1422 = vmatprep.mubr.msk.f32.mxu1 %vm434_vm1, %v391_v54  ;;  %v323_v50 = vadd.f32 %v1749_v47, %v1762_v61 }
  0xe2   :  { %1423 = vmatmul.mubr.msk.f32.vlgmr.msra.gmra.mrb[16].mxu1 %vm434_vm1, %v392_v56  ;;  %v394_v0 = vmax.f32 %v248_v57, 0.0  ;;  %v408_v56 = vmax.f32 %v318_v53, 0.0  ;;  %v328_v57 = vadd.f32 %v1758_v59, %v1749_v47 }
  0xe3   :  { %v393_v62 = vmax.f32 %v243_v60, 0.0  ;;  %v1374_v63 = vpop.f32.mrb[4].mxu0  ;;  %v1766_v3 = vpop.f32.mrb[4].mxu1  ;;  %v409_v54 = vmax.f32 %v323_v50, 0.0 }
  0xe4   :  { %v258_v1 = vadd.f32 %v1374_v63, %v1749_v47  ;;  %v252_v2 = vpop.f32.mrb[5].mxu0  ;;  %v332_v5 = vpop.f32.mrb[5].mxu1  ;;  %v410_v60 = vmax.f32 %v328_v57, 0.0  ;;  %v338_v61 = vadd.f32 %v1766_v3, %v1749_v47 }
  0xe5   :  { %v253_v4 = vadd.f32 %v1749_v47, %v252_v2  ;;  %1425 = vmatprep.mubr.msk.f32.mxu1 %vm434_vm1, %v393_v62  ;;  %v333_v55 = vadd.f32 %v1749_v47, %v332_v5 }
  0xe6   :  { %1426 = vmatmul.mubr.msk.f32.gmra.mrb[18].mxu1 %vm434_vm1, %v394_v0  ;;  %v396_v8 = vmax.f32 %v258_v1, 0.0  ;;  %v412_v0 = vmax.f32 %v338_v61, 0.0 }
  0xe7   :  { %v395_v6 = vmax.f32 %v253_v4, 0.0  ;;  %v1377_v7 = vpop.f32.mrb[6].mxu0  ;;  %v1772_v11 = vpop.f32.mrb[6].mxu1  ;;  %v411_v58 = vmax.f32 %v333_v55, 0.0 }
  0xe8   :  { %v268_v9 = vadd.f32 %v1377_v7, %v1749_v47  ;;  %v262_v10 = vpop.f32.mrb[7].mxu0  ;;  %v342_v13 = vpop.f32.mrb[7].mxu1  ;;  %v348_v59 = vadd.f32 %v1772_v11, %v1749_v47 }
  0xe9   :  { %v263_v12 = vadd.f32 %v1749_v47, %v262_v10  ;;  %1428 = vmatprep.mubr.msk.f32.mxu1 %vm434_vm1, %v395_v6  ;;  %v343_v51 = vadd.f32 %v1749_v47, %v342_v13 }
  0xea   :  { %1429 = vmatmul.mubr.msk.f32.gmra.mrb[20].mxu1 %vm434_vm1, %v396_v8  ;;  %v398_v16 = vmax.f32 %v268_v9, 0.0  ;;  %v414_v4 = vmax.f32 %v348_v59, 0.0 }
  0xeb   :  { %v397_v14 = vmax.f32 %v263_v12, 0.0  ;;  %v1380_v15 = vpop.f32.mrb[8].mxu0  ;;  %v1778_v19 = vpop.f32.mrb[8].mxu1  ;;  %v413_v62 = vmax.f32 %v343_v51, 0.0 }
  0xec   :  { %v278_v17 = vadd.f32 %v1380_v15, %v1749_v47  ;;  %v272_v18 = vpop.f32.mrb[9].mxu0  ;;  %v352_v21 = vpop.f32.mrb[9].mxu1  ;;  %v358_v3 = vadd.f32 %v1778_v19, %v1749_v47 }
  0xed   :  { %v273_v20 = vadd.f32 %v1749_v47, %v272_v18  ;;  %1431 = vmatprep.mubr.msk.f32.mxu1 %vm434_vm1, %v397_v14  ;;  %v353_v63 = vadd.f32 %v1749_v47, %v352_v21  ;;  %v1842_v18 = vld [vmem:[%s2076_s4] ss:$0 sm:$0xff] }
  0xee   :  { %1432 = vmatmul.mubr.msk.f32.gmra.mrb[22].mxu1 %vm434_vm1, %v398_v16  ;;  %v400_v24 = vmax.f32 %v278_v17, 0.0  ;;  %v416_v7 = vmax.f32 %v358_v3, 0.0  ;;  %v12_v17 = vstv %s2075_s6 }
  0xef   :  { %v399_v22 = vmax.f32 %v273_v20, 0.0  ;;  %v1383_v23 = vpop.f32.mrb[10].mxu0  ;;  %v1407_v27 = vpop.f32.mrb[10].mxu1  ;;  %v415_v1 = vmax.f32 %v353_v63, 0.0  ;;  %13 = vst [vmem:[#allocation2] sm:$0x1] %v12_v17 }
  0xf0   :  { %v288_v25 = vadd.f32 %v1383_v23, %v1749_v47  ;;  %v282_v26 = vpop.f32.mrb[11].mxu0  ;;  %v362_v29 = vpop.f32.mrb[11].mxu1  ;;  %v368_v8 = vadd.f32 %v1407_v27, %v1749_v47 }
  0xf1   :  { %v283_v28 = vadd.f32 %v1749_v47, %v282_v26  ;;  %1434 = vmatprep.mubr.msk.f32.mxu1 %vm434_vm1, %v399_v22  ;;  %v363_v2 = vadd.f32 %v1749_v47, %v362_v29 }
  0xf2   :  { %1435 = vmatmul.mubr.msk.f32.gmra.mrb[24].mxu1 %vm434_vm1, %v400_v24  ;;  %v402_v32 = vmax.f32 %v288_v25, 0.0  ;;  %v418_v11 = vmax.f32 %v368_v8, 0.0 }
  0xf3   :  { %v401_v30 = vmax.f32 %v283_v28, 0.0  ;;  %v1386_v31 = vpop.f32.mrb[12].mxu0  ;;  %v1410_v35 = vpop.f32.mrb[12].mxu1  ;;  %v417_v5 = vmax.f32 %v363_v2, 0.0 }
  0xf4   :  { %v298_v33 = vadd.f32 %v1386_v31, %v1749_v47  ;;  %v292_v34 = vpop.f32.mrb[13].mxu0  ;;  %v372_v37 = vpop.f32.mrb[13].mxu1  ;;  %v378_v12 = vadd.f32 %v1410_v35, %v1749_v47 }
  0xf5   :  { %v293_v36 = vadd.f32 %v1749_v47, %v292_v34  ;;  %1437 = vmatprep.mubr.msk.f32.mxu1 %vm434_vm1, %v401_v30  ;;  %v373_v6 = vadd.f32 %v1749_v47, %v372_v37 }
  0xf6   :  { %1438 = vmatmul.mubr.msk.f32.gmra.mrb[26].mxu1 %vm434_vm1, %v402_v32  ;;  %v404_v41 = vmax.f32 %v298_v33, 0.0  ;;  %v420_v14 = vmax.f32 %v378_v12, 0.0 }
  0xf7   :  { %v403_v38 = vmax.f32 %v293_v36, 0.0  ;;  %v1389_v39 = vpop.f32.mrb[14].mxu0  ;;  %v1413_v44 = vpop.f32.mrb[14].mxu1  ;;  %v419_v9 = vmax.f32 %v373_v6, 0.0 }
  0xf8   :  { %v308_v42 = vadd.f32 %v1389_v39, %v1749_v47  ;;  %v302_v43 = vpop.f32.mrb[15].mxu0  ;;  %v382_v46 = vpop.f32.mrb[15].mxu1  ;;  %v388_v15 = vadd.f32 %v1413_v44, %v1749_v47 }
  0xf9   :  { %v303_v45 = vadd.f32 %v1749_v47, %v302_v43  ;;  %1440 = vmatprep.mubr.msk.f32.mxu1 %vm434_vm1, %v403_v38  ;;  %v383_v10 = vadd.f32 %v1749_v47, %v382_v46 }
  0xfa   :  { %1441 = vmatmul.mubr.msk.f32.gmra.mrb[28].mxu1 %vm434_vm1, %v404_v41  ;;  %v406_v52 = vmax.f32 %v308_v42, 0.0  ;;  %v422_v16 = vmax.f32 %v388_v15, 0.0 }
  0xfb   :  { %v405_v48 = vmax.f32 %v303_v45, 0.0  ;;  %v421_v13 = vmax.f32 %v383_v10, 0.0 }
  0xfd   :  { %1443 = vmatprep.mubr.msk.f32.mxu1 %vm434_vm1, %v405_v48 }
  0xfe   :  { %1444 = vmatmul.mubr.msk.f32.gmra.mrb[30].mxu1 %vm434_vm1, %v406_v52 }
  0xff   :  { %1446 = vmatprep.mubr.msk.f32.mxu1 %vm434_vm1, %v407_v49 }
 0x102   :  { %1447 = vmatmul.mubr.msk.f32.gmra.mrb[32].mxu1 %vm434_vm1, %v408_v56 }
 0x103   :  { %1449 = vmatprep.mubr.msk.f32.mxu1 %vm434_vm1, %v409_v54 }
 0x106   :  { %1450 = vmatmul.mubr.msk.f32.gmra.mrb[34].mxu1 %vm434_vm1, %v410_v60 }
 0x107   :  { %1452 = vmatprep.mubr.msk.f32.mxu1 %vm434_vm1, %v411_v58 }
 0x10a   :  { %1453 = vmatmul.mubr.msk.f32.gmra.mrb[36].mxu1 %vm434_vm1, %v412_v0 }
 0x10b   :  { %1455 = vmatprep.mubr.msk.f32.mxu1 %vm434_vm1, %v413_v62 }
 0x10e   :  { %1456 = vmatmul.mubr.msk.f32.gmra.mrb[38].mxu1 %vm434_vm1, %v414_v4 }
 0x10f   :  { %1458 = vmatprep.mubr.msk.f32.mxu1 %vm434_vm1, %v415_v1 }
 0x112   :  { %1459 = vmatmul.mubr.msk.f32.gmra.mrb[40].mxu1 %vm434_vm1, %v416_v7 }
 0x113   :  { %1461 = vmatprep.mubr.msk.f32.mxu1 %vm434_vm1, %v417_v5 }
 0x116   :  { %1462 = vmatmul.mubr.msk.f32.gmra.mrb[42].mxu1 %vm434_vm1, %v418_v11 }
 0x117   :  { %1464 = vmatprep.mubr.msk.f32.mxu1 %vm434_vm1, %v419_v9 }
 0x11a   :  { %1465 = vmatmul.mubr.msk.f32.gmra.mrb[44].mxu1 %vm434_vm1, %v420_v14 }
 0x11b   :  { %1467 = vmatprep.mubr.msk.f32.mxu1 %vm434_vm1, %v421_v13 }
 0x11e   :  { %1468 = vmatmul.mubr.msk.f32.gmra.mrb[46].mxu1 %vm434_vm1, %v422_v16 }
 0x1b5   :  { %v1424_v19 = vpop.f32.mrb[16].mxu1 }
 0x1b6   :  { %v603_v47 = vadd.f32 %v1424_v19, %v1842_v18  ;;  %v597_v20 = vpop.f32.mrb[17].mxu1 }
 0x1b7   :  { %v598_v21 = vadd.f32 %v1842_v18, %v597_v20 }
 0x1b8   :  { %v757_v24 = vmax.f32 %v603_v47, 0.0 }
 0x1b9   :  { %v756_v22 = vmax.f32 %v598_v21, 0.0  ;;  %v1427_v23 = vpop.f32.mrb[18].mxu1 }
 0x1ba   :  { %v613_v25 = vadd.f32 %v1427_v23, %v1842_v18  ;;  %v607_v26 = vpop.f32.mrb[19].mxu1 }
 0x1bb   :  { %v608_v27 = vadd.f32 %v1842_v18, %v607_v26  ;;  %1478 = vmatprep.mubr.msk.f32.mxu0 %vm434_vm1, %v756_v22 }
 0x1bc   :  { %1479 = vmatmul.mubr.msk.f32.vlgmr.msra.gmra.mrb[16].mxu0 %vm434_vm1, %v757_v24  ;;  %v759_v30 = vmax.f32 %v613_v25, 0.0 }
 0x1bd   :  { %v758_v28 = vmax.f32 %v608_v27, 0.0  ;;  %v1430_v29 = vpop.f32.mrb[20].mxu1 }
 0x1be   :  { %v623_v31 = vadd.f32 %v1430_v29, %v1842_v18  ;;  %v617_v32 = vpop.f32.mrb[21].mxu1 }
 0x1bf   :  { %v618_v33 = vadd.f32 %v1842_v18, %v617_v32  ;;  %1481 = vmatprep.mubr.msk.f32.mxu0 %vm434_vm1, %v758_v28 }
 0x1c0   :  { %1482 = vmatmul.mubr.msk.f32.gmra.mrb[18].mxu0 %vm434_vm1, %v759_v30  ;;  %v761_v36 = vmax.f32 %v623_v31, 0.0 }
 0x1c1   :  { %v760_v34 = vmax.f32 %v618_v33, 0.0  ;;  %v1433_v35 = vpop.f32.mrb[22].mxu1 }
 0x1c2   :  { %v633_v37 = vadd.f32 %v1433_v35, %v1842_v18  ;;  %v627_v38 = vpop.f32.mrb[23].mxu1 }
 0x1c3   :  { %v628_v39 = vadd.f32 %v1842_v18, %v627_v38  ;;  %1484 = vmatprep.mubr.msk.f32.mxu0 %vm434_vm1, %v760_v34 }
 0x1c4   :  { %1485 = vmatmul.mubr.msk.f32.gmra.mrb[20].mxu0 %vm434_vm1, %v761_v36  ;;  %v763_v42 = vmax.f32 %v633_v37, 0.0 }
 0x1c5   :  { %v762_v40 = vmax.f32 %v628_v39, 0.0  ;;  %v1436_v41 = vpop.f32.mrb[24].mxu1 }
 0x1c6   :  { %v643_v43 = vadd.f32 %v1436_v41, %v1842_v18  ;;  %v637_v44 = vpop.f32.mrb[25].mxu1 }
 0x1c7   :  { %v638_v45 = vadd.f32 %v1842_v18, %v637_v44  ;;  %1487 = vmatprep.mubr.msk.f32.mxu0 %vm434_vm1, %v762_v40 }
 0x1c8   :  { %1488 = vmatmul.mubr.msk.f32.gmra.mrb[22].mxu0 %vm434_vm1, %v763_v42  ;;  %v765_v49 = vmax.f32 %v643_v43, 0.0 }
 0x1c9   :  { %v764_v46 = vmax.f32 %v638_v45, 0.0  ;;  %v1439_v48 = vpop.f32.mrb[26].mxu1 }
 0x1ca   :  { %v653_v50 = vadd.f32 %v1439_v48, %v1842_v18  ;;  %v647_v52 = vpop.f32.mrb[27].mxu1 }
 0x1cb   :  { %v648_v53 = vadd.f32 %v1842_v18, %v647_v52  ;;  %1490 = vmatprep.mubr.msk.f32.mxu0 %vm434_vm1, %v764_v46 }
 0x1cc   :  { %1491 = vmatmul.mubr.msk.f32.gmra.mrb[24].mxu0 %vm434_vm1, %v765_v49  ;;  %v767_v56 = vmax.f32 %v653_v50, 0.0 }
 0x1cd   :  { %v766_v54 = vmax.f32 %v648_v53, 0.0  ;;  %v1442_v55 = vpop.f32.mrb[28].mxu1  ;;  %v1908_v53 = vld [vmem:[#allocation2] ss:$0 sm:$0xff] }
 0x1ce   :  { %v663_v57 = vadd.f32 %v1442_v55, %v1842_v18  ;;  %v657_v58 = vpop.f32.mrb[29].mxu1 }
 0x1cf   :  { %v658_v51 = vadd.f32 %v1842_v18, %v657_v58  ;;  %1493 = vmatprep.mubr.msk.f32.mxu0 %vm434_vm1, %v766_v54 }
 0x1d0   :  { %1494 = vmatmul.mubr.msk.f32.gmra.mrb[26].mxu0 %vm434_vm1, %v767_v56  ;;  %v769_v62 = vmax.f32 %v663_v57, 0.0 }
 0x1d1   :  { %v768_v60 = vmax.f32 %v658_v51, 0.0  ;;  %v1445_v61 = vpop.f32.mrb[30].mxu1 }
 0x1d2   :  { %v673_v63 = vadd.f32 %v1445_v61, %v1842_v18  ;;  %v667_v0 = vpop.f32.mrb[31].mxu1 }
 0x1d3   :  { %v668_v59 = vadd.f32 %v1842_v18, %v667_v0  ;;  %1496 = vmatprep.mubr.msk.f32.mxu0 %vm434_vm1, %v768_v60 }
 0x1d4   :  { %1497 = vmatmul.mubr.msk.f32.gmra.mrb[28].mxu0 %vm434_vm1, %v769_v62  ;;  %v771_v4 = vmax.f32 %v673_v63, 0.0 }
 0x1d5   :  { %v770_v1 = vmax.f32 %v668_v59, 0.0  ;;  %v1448_v2 = vpop.f32.mrb[32].mxu1 }
 0x1d6   :  { %v683_v3 = vadd.f32 %v1448_v2, %v1842_v18  ;;  %v677_v5 = vpop.f32.mrb[33].mxu1 }
 0x1d7   :  { %v678_v6 = vadd.f32 %v1842_v18, %v677_v5  ;;  %1499 = vmatprep.mubr.msk.f32.mxu0 %vm434_vm1, %v770_v1 }
 0x1d8   :  { %1500 = vmatmul.mubr.msk.f32.gmra.mrb[30].mxu0 %vm434_vm1, %v771_v4  ;;  %v773_v9 = vmax.f32 %v683_v3, 0.0 }
 0x1d9   :  { %v772_v7 = vmax.f32 %v678_v6, 0.0  ;;  %v1451_v8 = vpop.f32.mrb[34].mxu1 }
 0x1da   :  { %v693_v10 = vadd.f32 %v1451_v8, %v1842_v18  ;;  %v687_v11 = vpop.f32.mrb[35].mxu1 }
 0x1db   :  { %v688_v12 = vadd.f32 %v1842_v18, %v687_v11  ;;  %1502 = vmatprep.mubr.msk.f32.mxu0 %vm434_vm1, %v772_v7 }
 0x1dc   :  { %1503 = vmatmul.mubr.msk.f32.gmra.mrb[32].mxu0 %vm434_vm1, %v773_v9  ;;  %v775_v15 = vmax.f32 %v693_v10, 0.0 }
 0x1dd   :  { %v774_v13 = vmax.f32 %v688_v12, 0.0  ;;  %v1454_v14 = vpop.f32.mrb[36].mxu1 }
 0x1de   :  { %v703_v16 = vadd.f32 %v1454_v14, %v1842_v18  ;;  %v697_v17 = vpop.f32.mrb[37].mxu1 }
 0x1df   :  { %v698_v19 = vadd.f32 %v1842_v18, %v697_v17  ;;  %1505 = vmatprep.mubr.msk.f32.mxu0 %vm434_vm1, %v774_v13 }
 0x1e0   :  { %1506 = vmatmul.mubr.msk.f32.gmra.mrb[34].mxu0 %vm434_vm1, %v775_v15  ;;  %v777_v21 = vmax.f32 %v703_v16, 0.0 }
 0x1e1   :  { %v776_v47 = vmax.f32 %v698_v19, 0.0  ;;  %v1457_v20 = vpop.f32.mrb[38].mxu1 }
 0x1e2   :  { %v713_v22 = vadd.f32 %v1457_v20, %v1842_v18  ;;  %v707_v23 = vpop.f32.mrb[39].mxu1 }
 0x1e3   :  { %v708_v24 = vadd.f32 %v1842_v18, %v707_v23  ;;  %1508 = vmatprep.mubr.msk.f32.mxu0 %vm434_vm1, %v776_v47 }
 0x1e4   :  { %1509 = vmatmul.mubr.msk.f32.gmra.mrb[36].mxu0 %vm434_vm1, %v777_v21  ;;  %v779_v27 = vmax.f32 %v713_v22, 0.0 }
 0x1e5   :  { %v778_v25 = vmax.f32 %v708_v24, 0.0  ;;  %v1460_v26 = vpop.f32.mrb[40].mxu1 }
 0x1e6   :  { %v723_v28 = vadd.f32 %v1460_v26, %v1842_v18  ;;  %v717_v29 = vpop.f32.mrb[41].mxu1 }
 0x1e7   :  { %v718_v30 = vadd.f32 %v1842_v18, %v717_v29  ;;  %1511 = vmatprep.mubr.msk.f32.mxu0 %vm434_vm1, %v778_v25 }
 0x1e8   :  { %1512 = vmatmul.mubr.msk.f32.gmra.mrb[38].mxu0 %vm434_vm1, %v779_v27  ;;  %v781_v33 = vmax.f32 %v723_v28, 0.0 }
 0x1e9   :  { %v780_v31 = vmax.f32 %v718_v30, 0.0  ;;  %v1463_v32 = vpop.f32.mrb[42].mxu1 }
 0x1ea   :  { %v733_v34 = vadd.f32 %v1463_v32, %v1842_v18  ;;  %v727_v35 = vpop.f32.mrb[43].mxu1 }
 0x1eb   :  { %v728_v36 = vadd.f32 %v1842_v18, %v727_v35  ;;  %1514 = vmatprep.mubr.msk.f32.mxu0 %vm434_vm1, %v780_v31 }
 0x1ec   :  { %1515 = vmatmul.mubr.msk.f32.gmra.mrb[40].mxu0 %vm434_vm1, %v781_v33  ;;  %v783_v39 = vmax.f32 %v733_v34, 0.0 }
 0x1ed   :  { %v782_v37 = vmax.f32 %v728_v36, 0.0  ;;  %v1466_v38 = vpop.f32.mrb[44].mxu1 }
 0x1ee   :  { %v743_v40 = vadd.f32 %v1466_v38, %v1842_v18  ;;  %v737_v41 = vpop.f32.mrb[45].mxu1 }
 0x1ef   :  { %v738_v42 = vadd.f32 %v1842_v18, %v737_v41  ;;  %1517 = vmatprep.mubr.msk.f32.mxu0 %vm434_vm1, %v782_v37 }
 0x1f0   :  { %1518 = vmatmul.mubr.msk.f32.gmra.mrb[42].mxu0 %vm434_vm1, %v783_v39  ;;  %v785_v45 = vmax.f32 %v743_v40, 0.0 }
 0x1f1   :  { %v784_v43 = vmax.f32 %v738_v42, 0.0  ;;  %v1469_v44 = vpop.f32.mrb[46].mxu1 }
 0x1f2   :  { %v753_v46 = vadd.f32 %v1469_v44, %v1842_v18  ;;  %v747_v48 = vpop.f32.mrb[47].mxu1 }
 0x1f3   :  { %v748_v49 = vadd.f32 %v1842_v18, %v747_v48  ;;  %1520 = vmatprep.mubr.msk.f32.mxu0 %vm434_vm1, %v784_v43 }
 0x1f4   :  { %1521 = vmatmul.mubr.msk.f32.gmra.mrb[44].mxu0 %vm434_vm1, %v785_v45  ;;  %v787_v52 = vmax.f32 %v753_v46, 0.0 }
 0x1f5   :  { %v786_v50 = vmax.f32 %v748_v49, 0.0 }
 0x1f7   :  { %1523 = vmatprep.mubr.msk.f32.mxu0 %vm434_vm1, %v786_v50 }
 0x1f8   :  { %1524 = vmatmul.mubr.msk.f32.gmra.mrb[46].mxu0 %vm434_vm1, %v787_v52 }
 0x28f   :  { %v1480_v54 = vpop.f32.mrb[16].mxu0 }
 0x290   :  { %v967_v55 = vadd.f32 %v1480_v54, %v1908_v53  ;;  %v961_v56 = vpop.f32.mrb[17].mxu0 }
 0x291   :  { %v962_v57 = vadd.f32 %v1908_v53, %v961_v56 }
 0x292   :  { %1122 = vst.msk [vmem:[%s2077_s7 + $0x8] sm:$0xff] %vm1120_vm2, %v967_v55 }
 0x293   :  { %1121 = vst.msk [vmem:[%s2077_s7] sm:$0xff] %vm1120_vm2, %v962_v57  ;;  %v1483_v18 = vpop.f32.mrb[18].mxu0 }
 0x294   :  { %v977_v58 = vadd.f32 %v1483_v18, %v1908_v53  ;;  %v971_v51 = vpop.f32.mrb[19].mxu0 }
 0x295   :  { %v972_v60 = vadd.f32 %v1908_v53, %v971_v51 }
 0x296   :  { %1124 = vst.msk [vmem:[%s2077_s7 + $0x18] sm:$0xff] %vm1120_vm2, %v977_v58 }
 0x297   :  { %1123 = vst.msk [vmem:[%s2077_s7 + $0x10] sm:$0xff] %vm1120_vm2, %v972_v60  ;;  %v1486_v61 = vpop.f32.mrb[20].mxu0 }
 0x298   :  { %v987_v62 = vadd.f32 %v1486_v61, %v1908_v53  ;;  %v981_v63 = vpop.f32.mrb[21].mxu0 }
 0x299   :  { %v982_v0 = vadd.f32 %v1908_v53, %v981_v63 }
 0x29a   :  { %1126 = vst.msk [vmem:[%s2077_s7 + $0x28] sm:$0xff] %vm1120_vm2, %v987_v62 }
 0x29b   :  { %1125 = vst.msk [vmem:[%s2077_s7 + $0x20] sm:$0xff] %vm1120_vm2, %v982_v0  ;;  %v1489_v59 = vpop.f32.mrb[22].mxu0 }
 0x29c   :  { %v997_v1 = vadd.f32 %v1489_v59, %v1908_v53  ;;  %v991_v2 = vpop.f32.mrb[23].mxu0 }
 0x29d   :  { %v992_v4 = vadd.f32 %v1908_v53, %v991_v2 }
 0x29e   :  { %1128 = vst.msk [vmem:[%s2077_s7 + $0x38] sm:$0xff] %vm1120_vm2, %v997_v1 }
 0x29f   :  { %1127 = vst.msk [vmem:[%s2077_s7 + $0x30] sm:$0xff] %vm1120_vm2, %v992_v4  ;;  %v1492_v3 = vpop.f32.mrb[24].mxu0 }
 0x2a0   :  { %v1007_v5 = vadd.f32 %v1492_v3, %v1908_v53  ;;  %v1001_v6 = vpop.f32.mrb[25].mxu0 }
 0x2a1   :  { %v1002_v7 = vadd.f32 %v1908_v53, %v1001_v6 }
 0x2a2   :  { %1130 = vst.msk [vmem:[%s2077_s7 + $0x48] sm:$0xff] %vm1120_vm2, %v1007_v5 }
 0x2a3   :  { %1129 = vst.msk [vmem:[%s2077_s7 + $0x40] sm:$0xff] %vm1120_vm2, %v1002_v7  ;;  %v1495_v8 = vpop.f32.mrb[26].mxu0 }
 0x2a4   :  { %v1017_v9 = vadd.f32 %v1495_v8, %v1908_v53  ;;  %v1011_v10 = vpop.f32.mrb[27].mxu0 }
 0x2a5   :  { %v1012_v11 = vadd.f32 %v1908_v53, %v1011_v10 }
 0x2a6   :  { %1132 = vst.msk [vmem:[%s2077_s7 + $0x58] sm:$0xff] %vm1120_vm2, %v1017_v9 }
 0x2a7   :  { %1131 = vst.msk [vmem:[%s2077_s7 + $0x50] sm:$0xff] %vm1120_vm2, %v1012_v11  ;;  %v1498_v12 = vpop.f32.mrb[28].mxu0 }
 0x2a8   :  { %v1027_v13 = vadd.f32 %v1498_v12, %v1908_v53  ;;  %v1021_v14 = vpop.f32.mrb[29].mxu0 }
 0x2a9   :  { %v1022_v15 = vadd.f32 %v1908_v53, %v1021_v14 }
 0x2aa   :  { %1134 = vst.msk [vmem:[%s2077_s7 + $0x68] sm:$0xff] %vm1120_vm2, %v1027_v13 }
 0x2ab   :  { %1133 = vst.msk [vmem:[%s2077_s7 + $0x60] sm:$0xff] %vm1120_vm2, %v1022_v15  ;;  %v1501_v16 = vpop.f32.mrb[30].mxu0 }
 0x2ac   :  { %v1037_v17 = vadd.f32 %v1501_v16, %v1908_v53  ;;  %v1031_v19 = vpop.f32.mrb[31].mxu0 }
 0x2ad   :  { %v1032_v47 = vadd.f32 %v1908_v53, %v1031_v19 }
 0x2ae   :  { %1136 = vst.msk [vmem:[%s2077_s7 + $0x78] sm:$0xff] %vm1120_vm2, %v1037_v17 }
 0x2af   :  { %1135 = vst.msk [vmem:[%s2077_s7 + $0x70] sm:$0xff] %vm1120_vm2, %v1032_v47  ;;  %v1504_v20 = vpop.f32.mrb[32].mxu0 }
 0x2b0   :  { %v1047_v21 = vadd.f32 %v1504_v20, %v1908_v53  ;;  %v1041_v22 = vpop.f32.mrb[33].mxu0 }
 0x2b1   :  { %v1042_v23 = vadd.f32 %v1908_v53, %v1041_v22 }
 0x2b2   :  { %1138 = vst.msk [vmem:[%s2077_s7 + $0x88] sm:$0xff] %vm1120_vm2, %v1047_v21 }
 0x2b3   :  { %1137 = vst.msk [vmem:[%s2077_s7 + $0x80] sm:$0xff] %vm1120_vm2, %v1042_v23  ;;  %v1507_v24 = vpop.f32.mrb[34].mxu0 }
 0x2b4   :  { %v1057_v25 = vadd.f32 %v1507_v24, %v1908_v53  ;;  %v1051_v26 = vpop.f32.mrb[35].mxu0 }
 0x2b5   :  { %v1052_v27 = vadd.f32 %v1908_v53, %v1051_v26 }
 0x2b6   :  { %1140 = vst.msk [vmem:[%s2077_s7 + $0x98] sm:$0xff] %vm1120_vm2, %v1057_v25 }
 0x2b7   :  { %1139 = vst.msk [vmem:[%s2077_s7 + $0x90] sm:$0xff] %vm1120_vm2, %v1052_v27  ;;  %v1510_v28 = vpop.f32.mrb[36].mxu0 }
 0x2b8   :  { %v1067_v29 = vadd.f32 %v1510_v28, %v1908_v53  ;;  %v1061_v30 = vpop.f32.mrb[37].mxu0 }
 0x2b9   :  { %v1062_v31 = vadd.f32 %v1908_v53, %v1061_v30 }
 0x2ba   :  { %1142 = vst.msk [vmem:[%s2077_s7 + $0xa8] sm:$0xff] %vm1120_vm2, %v1067_v29 }
 0x2bb   :  { %1141 = vst.msk [vmem:[%s2077_s7 + $0xa0] sm:$0xff] %vm1120_vm2, %v1062_v31  ;;  %v1513_v32 = vpop.f32.mrb[38].mxu0 }
 0x2bc   :  { %v1077_v33 = vadd.f32 %v1513_v32, %v1908_v53  ;;  %v1071_v34 = vpop.f32.mrb[39].mxu0 }
 0x2bd   :  { %v1072_v35 = vadd.f32 %v1908_v53, %v1071_v34 }
 0x2be   :  { %1144 = vst.msk [vmem:[%s2077_s7 + $0xb8] sm:$0xff] %vm1120_vm2, %v1077_v33 }
 0x2bf   :  { %1143 = vst.msk [vmem:[%s2077_s7 + $0xb0] sm:$0xff] %vm1120_vm2, %v1072_v35  ;;  %v1516_v36 = vpop.f32.mrb[40].mxu0 }
 0x2c0   :  { %v1087_v37 = vadd.f32 %v1516_v36, %v1908_v53  ;;  %v1081_v38 = vpop.f32.mrb[41].mxu0 }
 0x2c1   :  { %v1082_v39 = vadd.f32 %v1908_v53, %v1081_v38 }
 0x2c2   :  { %1146 = vst.msk [vmem:[%s2077_s7 + $0xc8] sm:$0xff] %vm1120_vm2, %v1087_v37 }
 0x2c3   :  { %1145 = vst.msk [vmem:[%s2077_s7 + $0xc0] sm:$0xff] %vm1120_vm2, %v1082_v39  ;;  %v1519_v40 = vpop.f32.mrb[42].mxu0 }
 0x2c4   :  { %v1097_v41 = vadd.f32 %v1519_v40, %v1908_v53  ;;  %v1091_v42 = vpop.f32.mrb[43].mxu0 }
 0x2c5   :  { %v1092_v43 = vadd.f32 %v1908_v53, %v1091_v42 }
 0x2c6   :  { %1148 = vst.msk [vmem:[%s2077_s7 + $0xd8] sm:$0xff] %vm1120_vm2, %v1097_v41 }
 0x2c7   :  { %1147 = vst.msk [vmem:[%s2077_s7 + $0xd0] sm:$0xff] %vm1120_vm2, %v1092_v43  ;;  %v1522_v44 = vpop.f32.mrb[44].mxu0 }
 0x2c8   :  { %v1107_v45 = vadd.f32 %v1522_v44, %v1908_v53  ;;  %v1101_v46 = vpop.f32.mrb[45].mxu0 }
 0x2c9   :  { %v1102_v48 = vadd.f32 %v1908_v53, %v1101_v46 }
 0x2ca   :  { %1150 = vst.msk [vmem:[%s2077_s7 + $0xe8] sm:$0xff] %vm1120_vm2, %v1107_v45 }
 0x2cb   :  { %1149 = vst.msk [vmem:[%s2077_s7 + $0xe0] sm:$0xff] %vm1120_vm2, %v1102_v48  ;;  %v1525_v49 = vpop.f32.mrb[46].mxu0 }
 0x2cc   :  { %v1117_v50 = vadd.f32 %v1525_v49, %v1908_v53  ;;  %v1111_v52 = vpop.f32.mrb[47].mxu0 }
 0x2cd   :  { %v1112_v54 = vadd.f32 %v1908_v53, %v1111_v52 }
 0x2ce   :  { %1152 = vst.msk [vmem:[%s2077_s7 + $0xf8] sm:$0xff] %vm1120_vm2, %v1117_v50 }
 0x2cf   :  { %1151 = vst.msk [vmem:[%s2077_s7 + $0xf0] sm:$0xff] %vm1120_vm2, %v1112_v54 }

</bundles_post_ra>
